<compile_context>
chip_gen: v5e
topology: v5e:2x2
jax: 0.10.0
libtpu: 0.0.40
codegen_flags: <defaults>
</compile_context>

<pallas_src>
import functools

import jax
import jax.numpy as jnp
import numpy as np
from jax.experimental import pallas as pl
from jax.experimental.pallas import tpu as pltpu

VOCAB = 115     # nn.Embedding(115, 100)
EMB = 100       # embedding dim == Conv1d in-channels
KERNEL = 5      # Conv1d kernel size

LANE = 128
SUBLANE = 8


def _round_up(x, m):
    return (x + m - 1) // m * m


def cnn_kernel(ids_ref, w_ref, b_ref, o_ref, *, T, Vp):
    """Fused embedding + Conv1d + global max-pool + bias + ReLU for one batch tile.

    ids_ref: (TB, L, 1)   int32  char ids
    w_ref:   (K, Vp, Dp)  bf16   fused (embedding o conv) weight per tap, zero padded
    b_ref:   (1, Dp)      f32    conv bias, zero padded
    o_ref:   (TB, Dp)     f32    pooled output
    """
    TB = ids_ref.shape[0]
    Dp = o_ref.shape[1]

    # K shifted "gathers" expressed as one-hot matmuls with the batch folded into the
    # MXU M dimension: (TB*T, Vp) x (Vp, Dp), f32 accumulation.  The one-hot LHS makes
    # the MXU result exact (only rounding is the bf16 quantization of w_eff).
    acc = jnp.zeros((TB * T, Dp), jnp.float32)
    for k in range(KERNEL):                                     # static unroll, K = 5
        ids_k = ids_ref[:, k:k + T, :]                          # (TB, T, 1) int32
        iota = jax.lax.broadcasted_iota(jnp.int32, (TB, T, Vp), 2)
        onehot = (ids_k == iota).astype(jnp.bfloat16)           # (TB, T, Vp)
        acc = acc + jnp.dot(onehot.reshape(TB * T, Vp), w_ref[k],
                            preferred_element_type=jnp.float32)

    pooled = jnp.max(acc.reshape(TB, T, Dp), axis=1)            # global max-pool over time
    # bias + ReLU after the pool (exact: bias is constant over T, relu is monotone).
    o_ref[...] = jnp.maximum(pooled + b_ref[...], 0.0)          # full-tile lane-dense store


def cnn_forward(span_chars, char_W, conv_w, conv_b):
    """span_chars: (B, L) int32 char ids.  Returns (B, D) f32."""
    B, L = span_chars.shape
    D = conv_w.shape[0]
    T = L - KERNEL + 1
    assert L >= KERNEL, "sequence length must be >= conv kernel size"

    Vp = _round_up(VOCAB, LANE)               # 115 -> 128 (zero pad: exact, ids < 115)
    Dp = _round_up(D, LANE)                   # 64  -> 128 (zero pad: exact)

    # Batch tile: whole batch if tiny, otherwise a multiple-of-8 tile (<= 128 rows).
    if B <= SUBLANE:
        TB = B
    else:
        TB = min(_round_up(B, SUBLANE), 128)
    Bp = _round_up(B, TB)

    # --- host-side (XLA) glue: fold embedding into the conv weight (one-time, tiny) ---
    # w_eff[k, v, d] = sum_c char_W[v, c] * conv_w[d, c, k]
    w_eff = jnp.einsum("vc,dck->kvd", char_W, conv_w)                     # (K, V, D) f32
    w_eff = jnp.pad(w_eff, ((0, 0), (0, Vp - VOCAB), (0, Dp - D)))
    w_eff = w_eff.astype(jnp.bfloat16)                                    # (K, Vp, Dp)
    b = jnp.pad(conv_b, (0, Dp - D)).reshape(1, Dp).astype(jnp.float32)

    ids = jnp.pad(span_chars, ((0, Bp - B), (0, 0))).astype(jnp.int32)    # pad batch (id 0)
    ids = ids[..., None]                                                  # (Bp, L, 1)

    grid = (Bp // TB,)
    cost = pl.CostEstimate(
        flops=2 * Bp * T * KERNEL * Vp * Dp,
        transcendentals=0,
        bytes_accessed=(ids.size * 4 + w_eff.size * 2 + b.size * 4 + Bp * Dp * 4),
    )

    out = pl.pallas_call(
        functools.partial(cnn_kernel, T=T, Vp=Vp),
        out_shape=jax.ShapeDtypeStruct((Bp, Dp), jnp.float32),
        grid=grid,
        in_specs=[
            pl.BlockSpec((TB, L, 1), lambda i: (i, 0, 0)),
            pl.BlockSpec((KERNEL, Vp, Dp), lambda i: (0, 0, 0)),
            pl.BlockSpec((1, Dp), lambda i: (0, 0)),
        ],
        out_specs=pl.BlockSpec((TB, Dp), lambda i: (i, 0)),
        compiler_params=pltpu.CompilerParams(
            dimension_semantics=("parallel",)),
        cost_estimate=cost,
    )(ids, w_eff, b)

    return out[:B, :D]


def cnn_reference(span_chars, char_W, conv_w, conv_b):
    """Pure-JAX reference mirroring the PyTorch forward (same fused-weight bf16 quantization)."""
    B, L = span_chars.shape
    D = conv_w.shape[0]
    T = L - KERNEL + 1
    w_eff = jnp.einsum("vc,dck->kvd", char_W, conv_w)           # (K, V, D) f32
    w_eff = w_eff.astype(jnp.bfloat16).astype(jnp.float32)      # mirror kernel operand precision
    acc = jnp.zeros((B, T, D), jnp.float32)
    for k in range(KERNEL):
        acc = acc + w_eff[k][span_chars[:, k:k + T]]            # (B, T, D)
    acc = jnp.maximum(acc + conv_b[None, None, :].astype(jnp.float32), 0.0)
    return jnp.max(acc, axis=1)                                 # (B, D)


if __name__ == "__main__":
    OUTPUT_DIM = 64
    B, L = 2, 12   # seq length must be >= KERNEL for the valid conv

    key = jax.random.PRNGKey(0)
    k0, k1, k2, k3 = jax.random.split(key, 4)

    # Deterministic synthetic parameters (shapes match the nn.Module __init__).
    char_W = 0.1 * jax.random.normal(k0, (VOCAB, EMB), dtype=jnp.float32)          # Embedding(115, 100)
    conv_w = 0.05 * jax.random.normal(k1, (OUTPUT_DIM, EMB, KERNEL), jnp.float32)  # Conv1d weight (D, C, K)
    conv_b = 0.01 * jax.random.normal(k2, (OUTPUT_DIM,), dtype=jnp.float32)        # Conv1d bias (D,)

    span_chars = jax.random.randint(k3, (B, L), 0, VOCAB, dtype=jnp.int32)

    out = cnn_forward(span_chars, char_W, conv_w, conv_b)
    out = jax.block_until_ready(out)

    ref = jax.block_until_ready(cnn_reference(span_chars, char_W, conv_w, conv_b))
    np.testing.assert_allclose(np.asarray(out), np.asarray(ref), rtol=1e-3, atol=1e-3)
    assert out.shape == (B, OUTPUT_DIM)

    print("KERNEL_OK")
</pallas_src>

<mosaic_0001>
module attributes {stable_mosaic.version = 11 : i64} {
  func.func @cnn_kernel(%arg0: i32, %arg1: memref<2x12x1xi32, #tpu.memory_space<vmem>>, %arg2: memref<5x128x128xbf16, #tpu.memory_space<vmem>>, %arg3: memref<1x128xf32, #tpu.memory_space<vmem>>, %arg4: memref<2x128xf32, #tpu.memory_space<vmem>>) attributes {dimension_semantics = [#tpu.dimension_semantics<parallel>], iteration_bounds = array<i64: 1>, scalar_prefetch = 0 : i64, scratch_operands = 0 : i64, tpu.core_type = #tpu.core_type<tc>, window_params = [{transform_indices = @transform_0, window_bounds = array<i64: 2, 12, 1>}, {pipeline_mode = #tpu.pipeline_mode<synchronous>, transform_indices = @transform_1, window_bounds = array<i64: 5, 128, 128>}, {pipeline_mode = #tpu.pipeline_mode<synchronous>, transform_indices = @transform_2, window_bounds = array<i64: 1, 128>}, {transform_indices = @transform_3, window_bounds = array<i64: 2, 128>}]} {
    %cst = arith.constant 0.000000e+00 : f32
    %0 = vector.broadcast %cst : f32 to vector<16x128xf32>
    %c0 = arith.constant 0 : index
    %c0_0 = arith.constant 0 : index
    %c0_1 = arith.constant 0 : index
    %1 = vector.load %arg1[%c0, %c0_0, %c0_1] : memref<2x12x1xi32, #tpu.memory_space<vmem>>, vector<2x8x1xi32>
    %2 = tpu.iota {dimensions = array<i32: 2>} : vector<2x8x128xi32>
    %3 = vector.broadcast %1 : vector<2x8x1xi32> to vector<2x8x128xi32>
    %4 = arith.cmpi eq, %3, %2 : vector<2x8x128xi32>
    %5 = arith.extui %4 : vector<2x8x128xi1> to vector<2x8x128xi32>
    %6 = arith.sitofp %5 : vector<2x8x128xi32> to vector<2x8x128xf32>
    %7 = arith.truncf %6 : vector<2x8x128xf32> to vector<2x8x128xbf16>
    %8 = vector.shape_cast %7 : vector<2x8x128xbf16> to vector<16x128xbf16>
    %c0_2 = arith.constant 0 : index
    %c0_3 = arith.constant 0 : index
    %c0_4 = arith.constant 0 : index
    %9 = vector.load %arg2[%c0_2, %c0_3, %c0_4] : memref<5x128x128xbf16, #tpu.memory_space<vmem>>, vector<1x128x128xbf16>
    %10 = vector.shape_cast %9 : vector<1x128x128xbf16> to vector<128x128xbf16>
    %cst_5 = arith.constant dense<0.000000e+00> : vector<16x128xf32>
    %11 = tpu.matmul %8, %10, %cst_5 {dimension_numbers = #tpu.dot_dimension_numbers<[1], [0], [0], [1], [0, 0, 1, 1], [], []>} : vector<16x128xbf16>, vector<128x128xbf16>, vector<16x128xf32> -> vector<16x128xf32>
    %12 = arith.addf %0, %11 : vector<16x128xf32>
    %c0_6 = arith.constant 0 : index
    %c1 = arith.constant 1 : index
    %c0_7 = arith.constant 0 : index
    %13 = vector.load %arg1[%c0_6, %c1, %c0_7] : memref<2x12x1xi32, #tpu.memory_space<vmem>>, vector<2x8x1xi32>
    %14 = tpu.iota {dimensions = array<i32: 2>} : vector<2x8x128xi32>
    %15 = vector.broadcast %13 : vector<2x8x1xi32> to vector<2x8x128xi32>
    %16 = arith.cmpi eq, %15, %14 : vector<2x8x128xi32>
    %17 = arith.extui %16 : vector<2x8x128xi1> to vector<2x8x128xi32>
    %18 = arith.sitofp %17 : vector<2x8x128xi32> to vector<2x8x128xf32>
    %19 = arith.truncf %18 : vector<2x8x128xf32> to vector<2x8x128xbf16>
    %20 = vector.shape_cast %19 : vector<2x8x128xbf16> to vector<16x128xbf16>
    %c1_8 = arith.constant 1 : index
    %c0_9 = arith.constant 0 : index
    %c0_10 = arith.constant 0 : index
    %21 = vector.load %arg2[%c1_8, %c0_9, %c0_10] : memref<5x128x128xbf16, #tpu.memory_space<vmem>>, vector<1x128x128xbf16>
    %22 = vector.shape_cast %21 : vector<1x128x128xbf16> to vector<128x128xbf16>
    %cst_11 = arith.constant dense<0.000000e+00> : vector<16x128xf32>
    %23 = tpu.matmul %20, %22, %cst_11 {dimension_numbers = #tpu.dot_dimension_numbers<[1], [0], [0], [1], [0, 0, 1, 1], [], []>} : vector<16x128xbf16>, vector<128x128xbf16>, vector<16x128xf32> -> vector<16x128xf32>
    %24 = arith.addf %12, %23 : vector<16x128xf32>
    %c0_12 = arith.constant 0 : index
    %c2 = arith.constant 2 : index
    %c0_13 = arith.constant 0 : index
    %25 = vector.load %arg1[%c0_12, %c2, %c0_13] : memref<2x12x1xi32, #tpu.memory_space<vmem>>, vector<2x8x1xi32>
    %26 = tpu.iota {dimensions = array<i32: 2>} : vector<2x8x128xi32>
    %27 = vector.broadcast %25 : vector<2x8x1xi32> to vector<2x8x128xi32>
    %28 = arith.cmpi eq, %27, %26 : vector<2x8x128xi32>
    %29 = arith.extui %28 : vector<2x8x128xi1> to vector<2x8x128xi32>
    %30 = arith.sitofp %29 : vector<2x8x128xi32> to vector<2x8x128xf32>
    %31 = arith.truncf %30 : vector<2x8x128xf32> to vector<2x8x128xbf16>
    %32 = vector.shape_cast %31 : vector<2x8x128xbf16> to vector<16x128xbf16>
    %c2_14 = arith.constant 2 : index
    %c0_15 = arith.constant 0 : index
    %c0_16 = arith.constant 0 : index
    %33 = vector.load %arg2[%c2_14, %c0_15, %c0_16] : memref<5x128x128xbf16, #tpu.memory_space<vmem>>, vector<1x128x128xbf16>
    %34 = vector.shape_cast %33 : vector<1x128x128xbf16> to vector<128x128xbf16>
    %cst_17 = arith.constant dense<0.000000e+00> : vector<16x128xf32>
    %35 = tpu.matmul %32, %34, %cst_17 {dimension_numbers = #tpu.dot_dimension_numbers<[1], [0], [0], [1], [0, 0, 1, 1], [], []>} : vector<16x128xbf16>, vector<128x128xbf16>, vector<16x128xf32> -> vector<16x128xf32>
    %36 = arith.addf %24, %35 : vector<16x128xf32>
    %c0_18 = arith.constant 0 : index
    %c3 = arith.constant 3 : index
    %c0_19 = arith.constant 0 : index
    %37 = vector.load %arg1[%c0_18, %c3, %c0_19] : memref<2x12x1xi32, #tpu.memory_space<vmem>>, vector<2x8x1xi32>
    %38 = tpu.iota {dimensions = array<i32: 2>} : vector<2x8x128xi32>
    %39 = vector.broadcast %37 : vector<2x8x1xi32> to vector<2x8x128xi32>
    %40 = arith.cmpi eq, %39, %38 : vector<2x8x128xi32>
    %41 = arith.extui %40 : vector<2x8x128xi1> to vector<2x8x128xi32>
    %42 = arith.sitofp %41 : vector<2x8x128xi32> to vector<2x8x128xf32>
    %43 = arith.truncf %42 : vector<2x8x128xf32> to vector<2x8x128xbf16>
    %44 = vector.shape_cast %43 : vector<2x8x128xbf16> to vector<16x128xbf16>
    %c3_20 = arith.constant 3 : index
    %c0_21 = arith.constant 0 : index
    %c0_22 = arith.constant 0 : index
    %45 = vector.load %arg2[%c3_20, %c0_21, %c0_22] : memref<5x128x128xbf16, #tpu.memory_space<vmem>>, vector<1x128x128xbf16>
    %46 = vector.shape_cast %45 : vector<1x128x128xbf16> to vector<128x128xbf16>
    %cst_23 = arith.constant dense<0.000000e+00> : vector<16x128xf32>
    %47 = tpu.matmul %44, %46, %cst_23 {dimension_numbers = #tpu.dot_dimension_numbers<[1], [0], [0], [1], [0, 0, 1, 1], [], []>} : vector<16x128xbf16>, vector<128x128xbf16>, vector<16x128xf32> -> vector<16x128xf32>
    %48 = arith.addf %36, %47 : vector<16x128xf32>
    %c0_24 = arith.constant 0 : index
    %c4 = arith.constant 4 : index
    %c0_25 = arith.constant 0 : index
    %49 = vector.load %arg1[%c0_24, %c4, %c0_25] : memref<2x12x1xi32, #tpu.memory_space<vmem>>, vector<2x8x1xi32>
    %50 = tpu.iota {dimensions = array<i32: 2>} : vector<2x8x128xi32>
    %51 = vector.broadcast %49 : vector<2x8x1xi32> to vector<2x8x128xi32>
    %52 = arith.cmpi eq, %51, %50 : vector<2x8x128xi32>
    %53 = arith.extui %52 : vector<2x8x128xi1> to vector<2x8x128xi32>
    %54 = arith.sitofp %53 : vector<2x8x128xi32> to vector<2x8x128xf32>
    %55 = arith.truncf %54 : vector<2x8x128xf32> to vector<2x8x128xbf16>
    %56 = vector.shape_cast %55 : vector<2x8x128xbf16> to vector<16x128xbf16>
    %c4_26 = arith.constant 4 : index
    %c0_27 = arith.constant 0 : index
    %c0_28 = arith.constant 0 : index
    %57 = vector.load %arg2[%c4_26, %c0_27, %c0_28] : memref<5x128x128xbf16, #tpu.memory_space<vmem>>, vector<1x128x128xbf16>
    %58 = vector.shape_cast %57 : vector<1x128x128xbf16> to vector<128x128xbf16>
    %cst_29 = arith.constant dense<0.000000e+00> : vector<16x128xf32>
    %59 = tpu.matmul %56, %58, %cst_29 {dimension_numbers = #tpu.dot_dimension_numbers<[1], [0], [0], [1], [0, 0, 1, 1], [], []>} : vector<16x128xbf16>, vector<128x128xbf16>, vector<16x128xf32> -> vector<16x128xf32>
    %60 = arith.addf %48, %59 : vector<16x128xf32>
    %61 = vector.shape_cast %60 : vector<16x128xf32> to vector<2x8x128xf32>
    %cst_30 = arith.constant dense<0xFF800000> : vector<2x128xf32>
    %62 = vector.multi_reduction <maximumf>, %61, %cst_30 [1] : vector<2x8x128xf32> to vector<2x128xf32>
    %c0_31 = arith.constant 0 : index
    %c0_32 = arith.constant 0 : index
    %63 = vector.load %arg3[%c0_31, %c0_32] : memref<1x128xf32, #tpu.memory_space<vmem>>, vector<1x128xf32>
    %64 = vector.broadcast %63 : vector<1x128xf32> to vector<2x128xf32>
    %65 = arith.addf %62, %64 : vector<2x128xf32>
    %cst_33 = arith.constant 0.000000e+00 : f32
    %66 = vector.broadcast %cst_33 : f32 to vector<2x128xf32>
    %67 = arith.maximumf %65, %66 : vector<2x128xf32>
    %c0_34 = arith.constant 0 : index
    %c0_35 = arith.constant 0 : index
    %68 = vector.load %arg4[%c0_34, %c0_35] : memref<2x128xf32, #tpu.memory_space<vmem>>, vector<2x128xf32>
    tpu.vector_store %arg4[%c0_34, %c0_35], %67 {strides = array<i32>} : memref<2x128xf32, #tpu.memory_space<vmem>>, vector<2x128xf32>,
    return
  }
  func.func @transform_0(%arg0: i32) -> (i32, i32, i32) {
    %c0_i32 = arith.constant 0 : i32
    %c0_i32_0 = arith.constant 0 : i32
    %c0_i32_1 = arith.constant 0 : i32
    return %arg0, %c0_i32, %c0_i32_0 : i32, i32, i32
  }
  func.func @transform_1(%arg0: i32) -> (i32, i32, i32) {
    %c0_i32 = arith.constant 0 : i32
    %c0_i32_0 = arith.constant 0 : i32
    %c0_i32_1 = arith.constant 0 : i32
    %c0_i32_2 = arith.constant 0 : i32
    return %c0_i32, %c0_i32_0, %c0_i32_1 : i32, i32, i32
  }
  func.func @transform_2(%arg0: i32) -> (i32, i32) {
    %c0_i32 = arith.constant 0 : i32
    %c0_i32_0 = arith.constant 0 : i32
    %c0_i32_1 = arith.constant 0 : i32
    return %c0_i32, %c0_i32_0 : i32, i32
  }
  func.func @transform_3(%arg0: i32) -> (i32, i32) {
    %c0_i32 = arith.constant 0 : i32
    %c0_i32_0 = arith.constant 0 : i32
    return %arg0, %c0_i32 : i32, i32
  }
}

</mosaic_0001>

<bundles_post_ra>
// kernel: tpu_custom_call.1
= control target key start
LH: loop header
LB: loop body
LE: loop exit
PB: predicated region body
PF: predicated region fallthrough
CT: control target
= control target key end

     0   :  { %8 = vsyncpa [#allocation3], 0  ;;  %s946_s0 = inlined_call_operand.vmem [shape: s32[2,12,1], index: 0, kind: input, shape index: {}]   ;;  %s947_s1 = inlined_call_operand.hbm [shape: bf16[5,128,128], index: 1, kind: input, shape index: {}]   ;;  %s948_s2 = inlined_call_operand.vmem [shape: f32[1,128], index: 2, kind: input, shape index: {}]   ;;  %s949_s3 = inlined_call_operand.hbm [shape: f32[2,128], index: 3, kind: output, shape index: {}]  }
   0x1   :  { %9 = vsyncpa [#allocation4], 0  ;;  %s16_s14 = sshll.u32 %s947_s1, 4  ;;  %s859_s15 = smov [#allocation2]   ;;  %s17_s14 = int_to_ptr.hbm [resolvable:$true] %s16_s14 }
   0x2   :  { %s18_s16 = sshll.u32 %s859_s15, 4  ;;  %s860_s17 = smov 64   ;;  %s19_s16 = int_to_ptr.vmem [resolvable:$true] %s18_s16 }
   0x3   :  { %s861_s18 = smov 4  }
   0x4   :  { %24 = dma.hbm_to_vmem [thread:$0]  %s17_s14, 5120, %s19_s16, [#allocation3], %s860_s17, %s860_s17, %s861_s18  }
   0x5   :  { %855 = dma.done.wait [#allocation3], 5120  }
   0x6   :  { %856 = vsyncadd [#allocation3], 4294962176  ;;  %v862_v0 = vmov 0   ;;  %v234_v1 = vld [vmem:[%s946_s0 + $0x2] sm:$0xff]  ;;  %v772_v4 = vld [vmem:[#allocation2 + $0x78] sm:$0xff]  ;;  %v33_v35 = vlaneseq  ;;  %v863_v48 = vmov 0.0  }
   0x7   :  { %804 = vset.pattern.permute.xlu1 %v862_v0  ;;  %803 = vset.pattern.permute.xlu0 %v862_v0  ;;  %v65_v2 = vld [vmem:[%s946_s0 + $0x1] sm:$0xff]  ;;  %v788_v5 = vld [vmem:[#allocation2 + $0xf8] sm:$0xff]  ;;  %v771_v10 = vld [vmem:[#allocation2 + $0x70] sm:$0xff]  ;;  %s864_s12 = smov [#allocation5]   ;;  %s577_s16 = sshll.u32 %s949_s3, 4  ;;  %vm566_vm10 = vcmask 1041409   ;;  %s578_s16 = int_to_ptr.hbm [resolvable:$true] %s577_s16 }
   0x8   :  { %805 = vset.pattern.permute.xlu2 %v862_v0  ;;  %237 = vperm.xlu1 %804, %v234_v1   ;;  %v337_v3 = vld [vmem:[%s946_s0 + $0x3] sm:$0xff]  ;;  %v235_v6 = vld [vmem:[%s946_s0 + $0x12] sm:$0xff]  ;;  %v918_v40 = vand.u32 127, %v33_v35  ;;  %s575_s13 = sshll.u32 %s864_s12, 4  ;;  %s576_s13 = int_to_ptr.vmem [resolvable:$true] %s575_s13 }
   0x9   :  { %68 = vperm.xlu0 %803, %v65_v2   ;;  %340 = vperm.xlu2 %805, %v337_v3   ;;  %v780_v7 = vld [vmem:[#allocation2 + $0xb8] sm:$0xff]  ;;  %v787_v11 = vld [vmem:[#allocation2 + $0xf0] sm:$0xff]  ;;  %v770_v13 = vld [vmem:[#allocation2 + $0x68] sm:$0xff] }
   0xa   :  { %152 = vmatpush.bf16.msra.mxu0 %v772_v4  ;;  %v66_v8 = vld [vmem:[%s946_s0 + $0x11] sm:$0xff]  ;;  %424 = vmatpush.bf16.msra.mxu3 %v788_v5  ;;  %v786_v14 = vld [vmem:[#allocation2 + $0xe8] sm:$0xff]  ;;  %v31_v16 = vld [vmem:[%s946_s0] sm:$0xff] }
   0xb   :  { %v338_v9 = vld [vmem:[%s946_s0 + $0x13] sm:$0xff]  ;;  %321 = vmatpush.bf16.msra.mxu2 %v780_v7  ;;  %v769_v17 = vld [vmem:[#allocation2 + $0x60] sm:$0xff]  ;;  %v778_v24 = vld [vmem:[#allocation2 + $0xa8] sm:$0xff] }
   0xc   :  { %v779_v12 = vld [vmem:[#allocation2 + $0xb0] sm:$0xff]  ;;  %v440_v18 = vld [vmem:[%s946_s0 + $0x4] sm:$0xff]  ;;  %v768_v20 = vld [vmem:[#allocation2 + $0x58] sm:$0xff] }
   0xd   :  { %v32_v15 = vld [vmem:[%s946_s0 + $0x10] sm:$0xff]  ;;  %v785_v19 = vld [vmem:[#allocation2 + $0xe0] sm:$0xff]  ;;  %v764_v23 = vld [vmem:[#allocation2 + $0x38] sm:$0xff] }
   0xe   :  { %153 = vmatpush.bf16.msra.mxu0 %v771_v10  ;;  %425 = vmatpush.bf16.msra.mxu3 %v787_v11  ;;  %v441_v21 = vld [vmem:[%s946_s0 + $0x14] sm:$0xff]  ;;  %v766_v26 = vld [vmem:[#allocation2 + $0x48] sm:$0xff]  ;;  %v777_v28 = vld [vmem:[#allocation2 + $0xa0] sm:$0xff] }
   0xf   :  { %322 = vmatpush.bf16.msra.mxu2 %v779_v12  ;;  %v767_v22 = vld [vmem:[#allocation2 + $0x50] sm:$0xff]  ;;  %v784_v25 = vld [vmem:[#allocation2 + $0xd8] sm:$0xff]  ;;  %220 = vmatpush.bf16.msra.mxu1 %v764_v23  ;;  %v765_v30 = vld [vmem:[#allocation2 + $0x40] sm:$0xff] }
  0x10   :  { %240 = vperm.xlu1 %804, %v235_v6   ;;  %v763_v27 = vld [vmem:[#allocation2 + $0x30] sm:$0xff]  ;;  %v762_v31 = vld [vmem:[#allocation2 + $0x28] sm:$0xff]  ;;  %v776_v32 = vld [vmem:[#allocation2 + $0x98] sm:$0xff] }
  0x11   :  { %71 = vperm.xlu0 %803, %v66_v8   ;;  %343 = vperm.xlu2 %805, %v338_v9   ;;  %v783_v29 = vld [vmem:[#allocation2 + $0xd0] sm:$0xff]  ;;  %v782_v33 = vld [vmem:[#allocation2 + $0xc8] sm:$0xff]  ;;  %v796_v34 = vld [vmem:[#allocation2 + $0x138] sm:$0xff] }
  0x12   :  { %154 = vmatpush.bf16.msra.mxu0 %v770_v13  ;;  %426 = vmatpush.bf16.msra.mxu3 %v786_v14  ;;  %v761_v36 = vld [vmem:[#allocation2 + $0x20] sm:$0xff]  ;;  %v775_v37 = vld [vmem:[#allocation2 + $0x90] sm:$0xff]  ;;  %v760_v41 = vld [vmem:[#allocation2 + $0x18] sm:$0xff] }
  0x13   :  { %323 = vmatpush.bf16.msra.mxu2 %v778_v24  ;;  %221 = vmatpush.bf16.msra.mxu1 %v763_v27  ;;  %v781_v38 = vld [vmem:[#allocation2 + $0xc0] sm:$0xff]  ;;  %v795_v39 = vld [vmem:[#allocation2 + $0x130] sm:$0xff]  ;;  %v774_v42 = vld [vmem:[#allocation2 + $0x88] sm:$0xff] }
  0x14   :  { %v794_v43 = vld [vmem:[#allocation2 + $0x128] sm:$0xff]  ;;  %v759_v45 = vld [vmem:[#allocation2 + $0x10] sm:$0xff]  ;;  %v773_v46 = vld [vmem:[#allocation2 + $0x80] sm:$0xff] }
  0x15   :  { %v793_v47 = vld [vmem:[#allocation2 + $0x120] sm:$0xff]  ;;  %v758_v51 = vld [vmem:[#allocation2 + $0x8] sm:$0xff]  ;;  %v792_v52 = vld [vmem:[#allocation2 + $0x118] sm:$0xff] }
  0x16   :  { %155 = vmatpush.bf16.msra.mxu0 %v769_v17  ;;  %427 = vmatpush.bf16.msra.mxu3 %v785_v19  ;;  %v757_v57 = vld [vmem:[#allocation2] sm:$0xff]  ;;  %v791_v58 = vld [vmem:[#allocation2 + $0x110] sm:$0xff]  ;;  %v790_v61 = vld [vmem:[#allocation2 + $0x108] sm:$0xff] }
  0x17   :  { %324 = vmatpush.bf16.msra.mxu2 %v777_v28  ;;  %222 = vmatpush.bf16.msra.mxu1 %v762_v31  ;;  %v789_v62 = vld [vmem:[#allocation2 + $0x100] sm:$0xff] }
  0x18   :  { %39 = vperm.xlu1 %804, %v32_v15  }
  0x19   :  { %36 = vperm.xlu0 %803, %v31_v16   ;;  %443 = vperm.xlu2 %805, %v440_v18  }
  0x1a   :  { %156 = vmatpush.bf16.msra.mxu0 %v768_v20  ;;  %428 = vmatpush.bf16.msra.mxu3 %v784_v25 }
  0x1b   :  { %325 = vmatpush.bf16.msra.mxu2 %v776_v32  ;;  %223 = vmatpush.bf16.msra.mxu1 %v761_v36 }
  0x1e   :  { %157 = vmatpush.bf16.msra.mxu0 %v767_v22  ;;  %429 = vmatpush.bf16.msra.mxu3 %v783_v29 }
  0x1f   :  { %326 = vmatpush.bf16.msra.mxu2 %v775_v37  ;;  %224 = vmatpush.bf16.msra.mxu1 %v760_v41 }
  0x21   :  { %446 = vperm.xlu0 %803, %v441_v21  }
  0x22   :  { %158 = vmatpush.bf16.msra.mxu0 %v766_v26  ;;  %430 = vmatpush.bf16.msra.mxu3 %v782_v33 }
  0x23   :  { %327 = vmatpush.bf16.msra.mxu2 %v774_v42  ;;  %225 = vmatpush.bf16.msra.mxu1 %v759_v45 }
  0x26   :  { %159 = vmatpush.bf16.msra.mxu0 %v765_v30  ;;  %431 = vmatpush.bf16.msra.mxu3 %v781_v38 }
  0x27   :  { %328 = vmatpush.bf16.msra.mxu2 %v773_v46  ;;  %226 = vmatpush.bf16.msra.mxu1 %v758_v51 }
  0x2a   :  { %527 = vmatpush.bf16.msrb.mxu0 %v796_v34 }
  0x2b   :  { %227 = vmatpush.bf16.msra.mxu1 %v757_v57 }
  0x2e   :  { %528 = vmatpush.bf16.msrb.mxu0 %v795_v39 }
  0x32   :  { %529 = vmatpush.bf16.msrb.mxu0 %v794_v43 }
  0x36   :  { %530 = vmatpush.bf16.msrb.mxu0 %v793_v47 }
  0x3a   :  { %531 = vmatpush.bf16.msrb.mxu0 %v792_v52 }
  0x3e   :  { %532 = vmatpush.bf16.msrb.mxu0 %v791_v58 }
  0x42   :  { %533 = vmatpush.bf16.msrb.mxu0 %v790_v61 }
  0x46   :  { %534 = vmatpush.bf16.msrb.mxu0 %v789_v62 }
  0x63   :  { %v341_v44 = vpop.permute.xlu2 %340 }
  0x64   :  { %vm345_vm0 = vcmp.eq.s32.totalorder %v341_v44, %v918_v40 }
  0x65   :  { %v689_v49 = vsel %vm345_vm0, 1.0, %v863_v48 }
  0x66   :  { %v351_v50 = vpack.c.bf16 %v689_v49, %v689_v49 }
  0x68   :  { %v372_v55 = vunpack.c.l.b16 %v351_v50 }
  0x6b   :  { %v344_v53 = vpop.permute.xlu2 %343 }
  0x6c   :  { %vm346_vm1 = vcmp.eq.s32.totalorder %v344_v53, %v918_v40 }
  0x6d   :  { %v690_v54 = vsel %vm346_vm1, 1.0, %v863_v48 }
  0x6e   :  { %v352_v56 = vpack.c.bf16 %v690_v54, %v690_v54 }
  0x70   :  { %v373_v59 = vunpack.c.l.b16 %v352_v56 }
  0x72   :  { %v374_v60 = vpack.c.b16 %v373_v59, %v372_v55 }
  0x73   :  { %v444_v15 = vpop.permute.xlu2 %443 }
  0x74   :  { %432 = vmatmul.bf16.vlgmr.msra.gmra.mxu3 %v374_v60  ;;  %vm448_vm8 = vcmp.eq.s32.totalorder %v444_v15, %v918_v40 }
  0x75   :  { %v723_v26 = vsel %vm448_vm8, 1.0, %v863_v48 }
  0x76   :  { %v454_v29 = vpack.c.bf16 %v723_v26, %v723_v26 }
  0x78   :  { %v475_v32 = vunpack.c.l.b16 %v454_v29 }
  0x7a   :  { %v238_v63 = vpop.permute.xlu1 %237 }
  0x7b   :  { %v69_v0 = vpop.permute.xlu0 %68  ;;  %vm242_vm2 = vcmp.eq.s32.totalorder %v238_v63, %v918_v40  ;;  %v806_v63 = vld [vmem:[%s948_s2] ss:$0 sm:$0xff] }
  0x7c   :  { %vm73_vm3 = vcmp.eq.s32.totalorder %v69_v0, %v918_v40  ;;  %v655_v1 = vsel %vm242_vm2, 1.0, %v863_v48 }
  0x7d   :  { %v589_v2 = vsel %vm73_vm3, 1.0, %v863_v48  ;;  %v248_v5 = vpack.c.bf16 %v655_v1, %v655_v1 }
  0x7e   :  { %v79_v6 = vpack.c.bf16 %v589_v2, %v589_v2 }
  0x7f   :  { %v269_v11 = vunpack.c.l.b16 %v248_v5 }
  0x80   :  { %v100_v12 = vunpack.c.l.b16 %v79_v6 }
  0x82   :  { %v241_v3 = vpop.permute.xlu1 %240 }
  0x83   :  { %v72_v4 = vpop.permute.xlu0 %71  ;;  %vm243_vm4 = vcmp.eq.s32.totalorder %v241_v3, %v918_v40 }
  0x84   :  { %vm74_vm5 = vcmp.eq.s32.totalorder %v72_v4, %v918_v40  ;;  %v656_v7 = vsel %vm243_vm4, 1.0, %v863_v48 }
  0x85   :  { %v590_v8 = vsel %vm74_vm5, 1.0, %v863_v48  ;;  %v249_v9 = vpack.c.bf16 %v656_v7, %v656_v7 }
  0x86   :  { %v80_v10 = vpack.c.bf16 %v590_v8, %v590_v8 }
  0x87   :  { %v270_v13 = vunpack.c.l.b16 %v249_v9 }
  0x88   :  { %v101_v14 = vunpack.c.l.b16 %v80_v10 }
  0x89   :  { %v271_v17 = vpack.c.b16 %v270_v13, %v269_v11 }
  0x8a   :  { %v102_v16 = vpack.c.b16 %v101_v14, %v100_v12  ;;  %v40_v18 = vpop.permute.xlu1 %39 }
  0x8b   :  { %v37_v19 = vpop.permute.xlu0 %36  ;;  %vm42_vm6 = vcmp.eq.s32.totalorder %v40_v18, %v918_v40  ;;  %329 = vmatmul.bf16.vlgmr.msra.gmra.mxu2 %v271_v17 }
  0x8c   :  { %vm41_vm7 = vcmp.eq.s32.totalorder %v37_v19, %v918_v40  ;;  %160 = vmatmul.bf16.vlgmr.msra.gmra.mxu0 %v102_v16  ;;  %v588_v20 = vsel %vm42_vm6, 1.0, %v863_v48 }
  0x8d   :  { %v587_v21 = vsel %vm41_vm7, 1.0, %v863_v48  ;;  %v48_v22 = vpack.c.bf16 %v588_v20, %v588_v20 }
  0x8e   :  { %v47_v23 = vpack.c.bf16 %v587_v21, %v587_v21 }
  0x8f   :  { %v169_v24 = vunpack.c.l.b16 %v48_v22 }
  0x90   :  { %v168_v25 = vunpack.c.l.b16 %v47_v23 }
  0x92   :  { %v170_v27 = vpack.c.b16 %v169_v24, %v168_v25 }
  0x93   :  { %v447_v28 = vpop.permute.xlu0 %446 }
  0x94   :  { %vm449_vm9 = vcmp.eq.s32.totalorder %v447_v28, %v918_v40  ;;  %228 = vmatmul.bf16.vlgmr.msra.gmra.mxu1 %v170_v27 }
  0x95   :  { %v724_v30 = vsel %vm449_vm9, 1.0, %v863_v48 }
  0x96   :  { %v455_v31 = vpack.c.bf16 %v724_v30, %v724_v30 }
  0x98   :  { %v476_v33 = vunpack.c.l.b16 %v455_v31 }
  0x9a   :  { %v477_v34 = vpack.c.b16 %v476_v33, %v475_v32 }
  0x9c   :  { %535 = vmatmul.bf16.vlgmr.msrb.gmra.mxu0 %v477_v34 }
  0xf7   :  { %v433_v42 = vpop.f32.mrf.mxu3 }
  0xff   :  { %v435_v51 = vpop.f32.mrf.mxu3 }
 0x109   :  { %v161_v35 = vpop.f32.mrf.mxu0 }
 0x10e   :  { %v330_v36 = vpop.f32.mrf.mxu2 }
 0x111   :  { %v163_v37 = vpop.f32.mrf.mxu0  ;;  %v229_v38 = vpop.f32.mrf.mxu1 }
 0x112   :  { %v230_v39 = vadd.f32 %v229_v38, %v161_v35 }
 0x114   :  { %v335_v41 = vadd.f32 %v330_v36, %v230_v39 }
 0x116   :  { %v438_v43 = vadd.f32 %v433_v42, %v335_v41  ;;  %v332_v47 = vpop.f32.mrf.mxu2 }
 0x119   :  { %v231_v44 = vpop.f32.mrf.mxu1  ;;  %v536_v45 = vpop.f32.mrf.mxu0 }
 0x11a   :  { %v232_v46 = vadd.f32 %v231_v44, %v163_v37  ;;  %v541_v40 = vadd.f32 %v536_v45, %v438_v43 }
 0x11c   :  { %v336_v49 = vadd.f32 %v332_v47, %v232_v46  ;;  %v543_v48 = vrot.slane %v541_v40, 4 }
 0x11e   :  { %v544_v50 = vmax.f32 %v541_v40, %v543_v48  ;;  %v439_v53 = vadd.f32 %v435_v51, %v336_v49 }
 0x120   :  { %v545_v52 = vrot.slane %v544_v50, 2 }
 0x121   :  { %v538_v54 = vpop.f32.mrf.mxu0 }
 0x122   :  { %v542_v55 = vadd.f32 %v538_v54, %v439_v53  ;;  %v546_v56 = vmax.f32 %v544_v50, %v545_v52 }
 0x124   :  { %v549_v57 = vrot.slane %v542_v55, 4  ;;  %v547_v59 = vrot.slane %v546_v56, 1 }
 0x126   :  { %v550_v58 = vmax.f32 %v542_v55, %v549_v57  ;;  %v548_v62 = vmax.f32 %v546_v56, %v547_v59 }
 0x128   :  { %v551_v60 = vrot.slane %v550_v58, 2  ;;  %v559_v2 = vadd.f32 %v806_v63, %v548_v62 }
 0x12a   :  { %v552_v61 = vmax.f32 %v550_v58, %v551_v60  ;;  %v561_v5 = vmax.f32 %v559_v2, 0.0 }
 0x12c   :  { %v553_v0 = vrot.slane %v552_v61, 1 }
 0x12e   :  { %v554_v1 = vmax.f32 %v552_v61, %v553_v0 }
 0x130   :  { %v560_v3 = vadd.f32 %v806_v63, %v554_v1 }
 0x132   :  { %v562_v4 = vmax.f32 %v560_v3, 0.0 }
 0x134   :  { %v565_v6 = vrot.slane %v562_v4, 7 }
 0x136   :  { %v567_v7 = vsel %vm566_vm10, %v565_v6, %v561_v5 }
 0x137   :  { %569 = vst [vmem:[#allocation5] sm:$0x3] %v567_v7 }
 0x138   :  { %580 = dma.vmem_to_hbm [thread:$0]  %s576_s13, 32, %s578_s16, [#allocation4]  }
 0x139   :  { %857 = dma.done.wait [#allocation4], 32  }
 0x13a   :  { %858 = vsyncadd [#allocation4], 4294967264 }
 0x13b   :  { %585 = vsyncpa [#allocation3], 1 }
 0x13c   :  { %586 = vsyncpa [#allocation4], 1 }

</bundles_post_ra>
